<compile_context>
chip_gen: v6e
topology: v6e:2x2x1
jax: 0.10.0
libtpu: 0.0.40
codegen_flags: <defaults>
</compile_context>

<pallas_src>
import functools

import jax
import jax.numpy as jnp
import numpy as np
from jax.experimental import pallas as pl
from jax.experimental.pallas import tpu as pltpu


# Per-block byte budget for the x tile (output tile is the same size; both are
# double-buffered by the pipeline -> ~4x this value of live VMEM, safely under
# the 32 MiB default scoped limit and the v7x 64 MiB physical VMEM).
_VMEM_BLOCK_BUDGET = 2 * 1024 * 1024


# --------------------------------------------------------------------------
# kernels
# --------------------------------------------------------------------------
def _wscale_bias_kernel_nchw(x_ref, b_ref, o_ref, *, scale):
    # x_ref: (TN, C, THW) tile   b_ref: (1, C, 1) resident   o_ref: (TN, C, THW)
    o_ref[...] = (x_ref[...] * scale + b_ref[...]).astype(o_ref.dtype)


def _wscale_bias_kernel_2d(x_ref, b_ref, o_ref, *, scale):
    # x_ref: (TN, F) tile        b_ref: (1, F) resident      o_ref: (TN, F)
    o_ref[...] = (x_ref[...] * scale + b_ref[...]).astype(o_ref.dtype)


def _wscale_kernel(x_ref, o_ref, *, scale):
    # bias-free path: pure scaling, any block shape.
    o_ref[...] = (x_ref[...] * scale).astype(o_ref.dtype)


# --------------------------------------------------------------------------
# tile-size helpers
# --------------------------------------------------------------------------
def _largest_aligned_divisor(n, align, cap):
    """Largest d dividing n with d % align == 0 and d <= cap (None if none)."""
    cap = min(cap, n)
    d = cap - (cap % align)
    while d >= align:
        if n % d == 0:
            return d
        d -= align
    return None


def _largest_divisor(n, cap):
    """Largest d dividing n with d <= cap (always >= 1)."""
    d = max(1, min(cap, n))
    while d > 1:
        if n % d == 0:
            return d
        d -= 1
    return 1


def _pick_hw_tile(hw, c, itemsize):
    """Lane tile: multiple of 128 dividing hw, sized toward the VMEM budget."""
    if hw % 128 != 0:
        return hw  # full extent (block dim == array dim is always legal)
    cap = max(128, _VMEM_BLOCK_BUDGET // max(1, c * itemsize))
    t = _largest_aligned_divisor(hw, 128, cap)
    return t if t is not None else hw


def _pick_batch_tile_4d(n, c, thw, itemsize):
    cap = max(1, _VMEM_BLOCK_BUDGET // max(1, c * thw * itemsize))
    return _largest_divisor(n, cap)


def _pick_batch_tile_2d(n, f, itemsize):
    if n % 8 != 0:
        return n  # full extent keeps the (8,128) rule satisfied
    cap = max(8, _VMEM_BLOCK_BUDGET // max(1, f * itemsize))
    t = _largest_aligned_divisor(n, 8, cap)
    return t if t is not None else n


# --------------------------------------------------------------------------
# wrapper
# --------------------------------------------------------------------------
def wscale_layer(x, b, *, scale):
    """Pallas TPU forward of WScaleLayer. `b` may be None (bias=False / b == 0)."""
    scale = float(scale)
    itemsize = jnp.dtype(x.dtype).itemsize

    if x.ndim == 4:
        N, C, H, W = x.shape
        HW = H * W
        x_r = x.reshape(N, C, HW)               # lane dim = H*W, sublane dim = C
        thw = _pick_hw_tile(HW, C, itemsize)
        tn = _pick_batch_tile_4d(N, C, thw, itemsize)
        grid = (N // tn, HW // thw)

        x_spec = pl.BlockSpec((tn, C, thw), lambda n, h: (n, 0, h))
        o_spec = pl.BlockSpec((tn, C, thw), lambda n, h: (n, 0, h))

        if b is not None:
            b_r = b.reshape(1, C, 1).astype(x.dtype)
            kernel = functools.partial(_wscale_bias_kernel_nchw, scale=scale)
            in_specs = [x_spec, pl.BlockSpec((1, C, 1), lambda n, h: (0, 0, 0))]
            operands = (x_r, b_r)
        else:
            kernel = functools.partial(_wscale_kernel, scale=scale)
            in_specs = [x_spec]
            operands = (x_r,)

        out = pl.pallas_call(
            kernel,
            out_shape=jax.ShapeDtypeStruct((N, C, HW), x.dtype),
            grid_spec=pltpu.PrefetchScalarGridSpec(
                num_scalar_prefetch=0,
                grid=grid,
                in_specs=in_specs,
                out_specs=o_spec,
            ),
            compiler_params=pltpu.CompilerParams(
                dimension_semantics=("parallel", "parallel")),
        )(*operands)
        return out.reshape(N, C, H, W)

    if x.ndim == 2:
        N, F = x.shape
        tn = _pick_batch_tile_2d(N, F, itemsize)
        grid = (N // tn,)

        x_spec = pl.BlockSpec((tn, F), lambda i: (i, 0))

        if b is not None:
            b_r = b.reshape(1, F).astype(x.dtype)
            kernel = functools.partial(_wscale_bias_kernel_2d, scale=scale)
            in_specs = [x_spec, pl.BlockSpec((1, F), lambda i: (0, 0))]
            operands = (x, b_r)
        else:
            kernel = functools.partial(_wscale_kernel, scale=scale)
            in_specs = [x_spec]
            operands = (x,)

        return pl.pallas_call(
            kernel,
            out_shape=jax.ShapeDtypeStruct((N, F), x.dtype),
            grid_spec=pltpu.PrefetchScalarGridSpec(
                num_scalar_prefetch=0,
                grid=grid,
                in_specs=in_specs,
                out_specs=x_spec,
            ),
            compiler_params=pltpu.CompilerParams(
                dimension_semantics=("parallel",)),
        )(*operands)

    raise ValueError(f"WScaleLayer: unsupported input rank {x.ndim}")


# --------------------------------------------------------------------------
# pure-JAX reference (transcription of the PyTorch forward)
# --------------------------------------------------------------------------
def _reference(x, b, scale):
    y = x * scale
    if b is not None:
        if x.ndim == 4:
            y = y + b.reshape(1, -1, 1, 1)
        elif x.ndim == 2:
            y = y + b.reshape(1, -1)
    return y.astype(x.dtype)


# --------------------------------------------------------------------------
if __name__ == "__main__":
    key = jax.random.PRNGKey(0)
    k1, k2, k3, k4 = jax.random.split(key, 4)

    gain = np.sqrt(2.0)

    # 4-D conv-activation case: size (=C) = 4, fan_in = C_in * k * k = 4*3*3
    size4, fan_in4 = 4, 4 * 3 * 3
    scale4 = gain / np.sqrt(fan_in4)
    x4 = jax.random.normal(k1, (2, size4, 16, 16), dtype=jnp.float32)
    b4 = jax.random.normal(k2, (size4,), dtype=jnp.float32)

    y4 = jax.block_until_ready(wscale_layer(x4, b4, scale=scale4))
    r4 = _reference(x4, b4, scale4)
    assert y4.shape == (2, size4, 16, 16), y4.shape
    assert jnp.allclose(y4, r4, atol=1e-6, rtol=1e-6), \
        float(jnp.max(jnp.abs(y4 - r4)))

    # 2-D fully-connected case: size = 32, fan_in = 32
    size2, fan_in2 = 32, 32
    scale2 = gain / np.sqrt(fan_in2)
    x2 = jax.random.normal(k3, (2, size2), dtype=jnp.float32)
    b2 = jax.random.normal(k4, (size2,), dtype=jnp.float32)

    y2 = jax.block_until_ready(wscale_layer(x2, b2, scale=scale2))
    r2 = _reference(x2, b2, scale2)
    assert y2.shape == (2, size2), y2.shape
    assert jnp.allclose(y2, r2, atol=1e-6, rtol=1e-6), \
        float(jnp.max(jnp.abs(y2 - r2)))

    # bias=False path (self.b == 0): pure scaling
    y4n = jax.block_until_ready(wscale_layer(x4, None, scale=scale4))
    assert jnp.allclose(y4n, x4 * scale4, atol=1e-6, rtol=1e-6)

    print("KERNEL_OK")
</pallas_src>

<mosaic_0001>
module attributes {stable_mosaic.version = 11 : i64} {
  func.func @_wscale_bias_kernel_nchw(%arg0: i32, %arg1: i32, %arg2: memref<2x4x256xf32, #tpu.memory_space<vmem>>, %arg3: memref<1x4x1xf32, #tpu.memory_space<vmem>>, %arg4: memref<2x4x256xf32, #tpu.memory_space<vmem>>) attributes {dimension_semantics = [#tpu.dimension_semantics<parallel>, #tpu.dimension_semantics<parallel>], iteration_bounds = array<i64: 1, 1>, scalar_prefetch = 0 : i64, scratch_operands = 0 : i64, tpu.core_type = #tpu.core_type<tc>, window_params = [{transform_indices = @transform_0, window_bounds = array<i64: 2, 4, 256>}, {pipeline_mode = #tpu.pipeline_mode<synchronous>, transform_indices = @transform_1, window_bounds = array<i64: 1, 4, 1>}, {transform_indices = @transform_2, window_bounds = array<i64: 2, 4, 256>}]} {
    %c0 = arith.constant 0 : index
    %c0_0 = arith.constant 0 : index
    %c0_1 = arith.constant 0 : index
    %0 = vector.load %arg2[%c0, %c0_0, %c0_1] : memref<2x4x256xf32, #tpu.memory_space<vmem>>, vector<2x4x256xf32>
    %cst = arith.constant 0.235702261 : f32
    %1 = vector.broadcast %cst : f32 to vector<2x4x256xf32>
    %2 = arith.mulf %0, %1 : vector<2x4x256xf32>
    %c0_2 = arith.constant 0 : index
    %c0_3 = arith.constant 0 : index
    %c0_4 = arith.constant 0 : index
    %3 = vector.load %arg3[%c0_2, %c0_3, %c0_4] : memref<1x4x1xf32, #tpu.memory_space<vmem>>, vector<1x4x1xf32>
    %4 = vector.broadcast %3 : vector<1x4x1xf32> to vector<2x4x256xf32>
    %5 = arith.addf %2, %4 : vector<2x4x256xf32>
    %c0_5 = arith.constant 0 : index
    %c0_6 = arith.constant 0 : index
    %c0_7 = arith.constant 0 : index
    %6 = vector.load %arg4[%c0_5, %c0_6, %c0_7] : memref<2x4x256xf32, #tpu.memory_space<vmem>>, vector<2x4x256xf32>
    tpu.vector_store %arg4[%c0_5, %c0_6, %c0_7], %5 {strides = array<i32>} : memref<2x4x256xf32, #tpu.memory_space<vmem>>, vector<2x4x256xf32>,
    return
  }
  func.func @transform_0(%arg0: i32, %arg1: i32) -> (i32, i32, i32) {
    %c0_i32 = arith.constant 0 : i32
    %c0_i32_0 = arith.constant 0 : i32
    return %arg0, %c0_i32, %arg1 : i32, i32, i32
  }
  func.func @transform_1(%arg0: i32, %arg1: i32) -> (i32, i32, i32) {
    %c0_i32 = arith.constant 0 : i32
    %c0_i32_0 = arith.constant 0 : i32
    %c0_i32_1 = arith.constant 0 : i32
    %c0_i32_2 = arith.constant 0 : i32
    return %c0_i32, %c0_i32_0, %c0_i32_1 : i32, i32, i32
  }
  func.func @transform_2(%arg0: i32, %arg1: i32) -> (i32, i32, i32) {
    %c0_i32 = arith.constant 0 : i32
    %c0_i32_0 = arith.constant 0 : i32
    return %arg0, %c0_i32, %arg1 : i32, i32, i32
  }
}

</mosaic_0001>

<bundles_post_ra>
// kernel: tpu_custom_call.1
= control target key start
LH: loop header
LB: loop body
LE: loop exit
PB: predicated region body
PF: predicated region fallthrough
CT: control target
= control target key end

     0   :  { %7 = vsyncpa [#allocation3], 0  ;;  %s151_s0 = inlined_call_operand.hbm [shape: f32[2,4,256], index: 0, kind: input, shape index: {}]   ;;  %s152_s1 = inlined_call_operand.vmem [shape: f32[1,4,1], index: 1, kind: input, shape index: {}]   ;;  %s153_s2 = inlined_call_operand.hbm [shape: f32[2,4,256], index: 2, kind: output, shape index: {}]  }
   0x1   :  { %8 = vsyncpa [#allocation4], 0  ;;  %s115_s9 = smov [#allocation2]  }
   0x2   :  { %s14_s10 = sshll.u32 %s115_s9, 4  ;;  %s15_s10 = int_to_ptr.vmem [resolvable:$true] %s14_s10 }
   0x3   :  { %s79_s11 = scalar_lea.vmem %s15_s10, 256  ;;  %p84_p1 = scmp.lt.s32.totalorder %s15_s10, %s15_s10 }
   0x4   :  { %p80_p0 = scmp.ne.s32.totalorder %s15_s10, %s79_s11  ;;  %p85_p2 = scmp.lt.s32.totalorder %s79_s11, %s79_s11 }
   0x6   :  { %p86_p3 = por %p85_p2, %p84_p1 }
   0x8   :  { %p87_p4 = pnand %p86_p3, %p80_p0 }
   0xa   :  { %90 = shalt.err (!%p87_p4)
}
   0xb   :  { %s116_s12 = smov 128   ;;  %s117_s13 = smov 8  }
   0xc   :  { %20 = dma.hbm_to_vmem [thread:$0]  %s151_s0, 256, %s15_s10, [#allocation3], %s116_s12, %s116_s12, %s117_s13  }
   0xd   :  { %111 = dma.done.wait [#allocation3], 256  }
   0xe   :  { %112 = vsyncadd [#allocation3], 4294967040  ;;  %v118_v0 = vmov 0   ;;  %v30_v1 = vld [vmem:[%s152_s1] sm:$0xf]  ;;  %v38_v4 = vlaneseq  ;;  %v27_v8 = vld [vmem:[#allocation2 + $0x8] sm:$0xff] }
   0xf   :  { %70 = vset.pattern.permute.xlu0 %v118_v0  ;;  %v119_v2 = vmov 839922192   ;;  %v26_v7 = vld [vmem:[#allocation2] sm:$0xff]  ;;  %v29_v11 = vmul.f32 0.23570226, %v27_v8  ;;  %s120_s0 = smov [#allocation5]  }
  0x10   :  { %33 = vperm.xlu0 %70, %v30_v1   ;;  %v36_v3 = vunpack.c.l.s4 %v119_v2  ;;  %v39_v6 = vshrl.u32 %v38_v4, 7  ;;  %v28_v10 = vmul.f32 0.23570226, %v26_v7  ;;  %s52_s18 = sshll.u32 %s120_s0, 4  ;;  %s53_s18 = int_to_ptr.vmem [resolvable:$true] %s52_s18 }
  0x11   :  { %s91_s1 = scalar_lea.vmem %s53_s18, 256  ;;  %p96_p6 = scmp.lt.s32.totalorder %s53_s18, %s53_s18 }
  0x12   :  { %v37_v5 = vunpack.c.0.s8 %v36_v3  ;;  %p92_p5 = scmp.ne.s32.totalorder %s53_s18, %s91_s1  ;;  %p97_p7 = scmp.lt.s32.totalorder %s91_s1, %s91_s1 }
  0x14   :  { %v40_v9 = vsub.s32 %v37_v5, %v39_v6  ;;  %p98_p8 = por %p97_p7, %p96_p6 }
  0x16   :  { %p99_p9 = pnand %p98_p8, %p92_p5 }
  0x8b   :  { %v34_v12 = vpop.permute.xlu0 %33 }
  0x8c   :  { %v41_v13 = vrot.slane %v34_v12, %v40_v9 }
  0x8e   :  { %v43_v14 = vadd.f32 %v41_v13, %v28_v10  ;;  %v44_v15 = vadd.f32 %v41_v13, %v29_v11 }
  0x90   :  { %45 = vst [vmem:[#allocation5] sm:$0xff] %v43_v14  ;;  %46 = vst [vmem:[#allocation5 + $0x8] sm:$0xff] %v44_v15 }
  0x91   :  { %102 = shalt.err (!%p99_p9)
}
  0x92   :  { %58 = dma.vmem_to_hbm [thread:$0]  %s53_s18, 256, %s153_s2, [#allocation4], %s116_s12, %s116_s12, %s117_s13  }
  0x93   :  { %113 = dma.done.wait [#allocation4], 256  }
  0x94   :  { %114 = vsyncadd [#allocation4], 4294967040 }
  0x95   :  { %62 = vsyncpa [#allocation3], 1 }
  0x96   :  { %63 = vsyncpa [#allocation4], 1 }

</bundles_post_ra>
